<compile_context>
chip_gen: v6e
topology: v6e:2x2x1
jax: 0.10.0
libtpu: 0.0.40
codegen_flags: <defaults>
</compile_context>

<pallas_src>
import functools

import jax
import jax.numpy as jnp
from jax.experimental import pallas as pl
from jax.experimental.pallas import tpu as pltpu


# ----------------------------------------------------------------------------
# Fused kernel: L x (Linear[no bias] -> BatchNorm1d(train) -> optional ReLU)
# ----------------------------------------------------------------------------
def _fused_mlp_kernel(x_ref, *args, eps: float, relu_flags: tuple):
    """Refs: x_ref, w_ref[0..L-1] (in_dim x out_dim, bf16), gb_ref (2L, N), o_ref."""
    n_layers = len(relu_flags)
    w_refs = args[:n_layers]
    gb_ref = args[n_layers]
    o_ref = args[n_layers + 1]

    inv_b = jnp.float32(1.0 / x_ref.shape[0])

    h = x_ref[...].astype(jnp.float32)          # (B, d0) activation, f32
    for li in range(n_layers):
        # Linear (bias dropped -- cancelled by BN mean subtraction):
        # bf16 operands on the MXU, f32 accumulation.
        y = jnp.dot(h.astype(jnp.bfloat16), w_refs[li][...],
                    preferred_element_type=jnp.float32)       # (B, N) f32

        # BatchNorm1d, training-mode semantics (batch stats, biased var),
        # single pass: mean and E[y^2] in one sweep over the batch axis.
        mean = jnp.sum(y, axis=0, keepdims=True) * inv_b      # (1, N)
        ex2 = jnp.sum(y * y, axis=0, keepdims=True) * inv_b   # (1, N)
        var = jnp.maximum(ex2 - mean * mean, 0.0)

        gamma = gb_ref[2 * li: 2 * li + 1, :]                 # (1, N) f32
        beta = gb_ref[2 * li + 1: 2 * li + 2, :]              # (1, N) f32
        scale = gamma * jax.lax.rsqrt(var + eps)              # fold gamma in

        y = (y - mean) * scale + beta
        if relu_flags[li]:
            y = jnp.maximum(y, 0.0)
        h = y                                                  # stays on-chip

    o_ref[...] = h.astype(o_ref.dtype)


def _fused_mlp(x, w_ts, gb, *, relu_flags, eps=1e-5):
    """x: (B, d_in) f32; w_ts: list of (d_in_l, d_out_l) bf16; gb: (2L, N) f32."""
    B = x.shape[0]
    out_dim = w_ts[-1].shape[1]

    kernel = functools.partial(_fused_mlp_kernel, eps=eps, relu_flags=relu_flags)

    in_specs = [pl.BlockSpec(x.shape, lambda i: (0, 0))]
    in_specs += [pl.BlockSpec(w.shape, lambda i: (0, 0)) for w in w_ts]
    in_specs += [pl.BlockSpec(gb.shape, lambda i: (0, 0))]

    return pl.pallas_call(
        kernel,
        out_shape=jax.ShapeDtypeStruct((B, out_dim), x.dtype),
        grid=(1,),  # BN needs full-batch stats; whole problem fits in VMEM at these dims
        in_specs=in_specs,
        out_specs=pl.BlockSpec((B, out_dim), lambda i: (0, 0)),
        compiler_params=pltpu.CompilerParams(
            dimension_semantics=("arbitrary",)),
    )(x, *w_ts, gb)


# ----------------------------------------------------------------------------
# projection_MLP: params + forward
# ----------------------------------------------------------------------------
def init_projection_mlp_params(key, in_dim, hidden_dim=128, out_dim=128,
                               dtype=jnp.float32):
    """PyTorch-default-style init.

    Linear: weight (out, in) ~ U(-1/sqrt(in), 1/sqrt(in)); bias same range
    (bias is kept only for the reference -- it cancels under training BN).
    BatchNorm1d: gamma=1, beta=0.
    Layer3's BN is BatchNorm1d(hidden_dim) (as in the PyTorch module), so
    out_dim must equal hidden_dim.
    Weights are also stored pre-transposed + pre-cast to bf16 (MXU-ready),
    so no transpose/cast happens on the forward critical path.
    """
    assert out_dim == hidden_dim, "layer3 BN is BatchNorm1d(hidden_dim)"
    dims = [(in_dim, hidden_dim), (hidden_dim, hidden_dim), (hidden_dim, out_dim)]
    params = []
    for d_in, d_out in dims:
        key, kw, kb = jax.random.split(key, 3)
        bound = 1.0 / (d_in ** 0.5)
        w = jax.random.uniform(kw, (d_out, d_in), dtype, -bound, bound)
        b = jax.random.uniform(kb, (d_out,), dtype, -bound, bound)
        params.append({
            "w": w,                                   # (out, in) f32, PyTorch layout
            "b": b,                                   # kept for reference only
            "w_t_bf16": w.T.astype(jnp.bfloat16),     # (in, out) bf16, kernel-ready
            "gamma": jnp.ones((d_out,), dtype),
            "beta": jnp.zeros((d_out,), dtype),
        })
    return params


def projection_mlp_forward(x, params, num_layers=3, eps=1e-5):
    """Matches projection_MLP.forward (num_layers in {2, 3})."""
    if num_layers == 3:
        layer_ids, relu_flags = (0, 1, 2), (True, True, False)
    elif num_layers == 2:
        layer_ids, relu_flags = (0, 2), (True, False)
    else:
        raise Exception

    w_ts = [params[i]["w_t_bf16"] for i in layer_ids]
    gb = jnp.concatenate(
        [jnp.stack([params[i]["gamma"], params[i]["beta"]]) for i in layer_ids],
        axis=0).astype(jnp.float32)                   # (2L, N), one tiny DMA

    return _fused_mlp(x, w_ts, gb, relu_flags=relu_flags, eps=eps)


# ----------------------------------------------------------------------------
# Pure-JAX references (for sanity checks)
# ----------------------------------------------------------------------------
def _ref_layer(x, p, apply_relu, eps=1e-5, matmul_bf16=True):
    if matmul_bf16:
        y = jnp.dot(x.astype(jnp.bfloat16), p["w"].T.astype(jnp.bfloat16),
                    preferred_element_type=jnp.float32) + p["b"]
    else:
        y = x @ p["w"].T + p["b"]
    mean = jnp.mean(y, axis=0, keepdims=True)
    var = jnp.mean((y - mean) ** 2, axis=0, keepdims=True)
    y = (y - mean) / jnp.sqrt(var + eps)
    y = y * p["gamma"] + p["beta"]
    return jnp.maximum(y, 0.0) if apply_relu else y


def projection_mlp_ref(x, params, num_layers=3, matmul_bf16=True):
    if num_layers == 3:
        x = _ref_layer(x, params[0], True, matmul_bf16=matmul_bf16)
        x = _ref_layer(x, params[1], True, matmul_bf16=matmul_bf16)
        x = _ref_layer(x, params[2], False, matmul_bf16=matmul_bf16)
    else:
        x = _ref_layer(x, params[0], True, matmul_bf16=matmul_bf16)
        x = _ref_layer(x, params[2], False, matmul_bf16=matmul_bf16)
    return x


if __name__ == "__main__":
    key = jax.random.PRNGKey(0)
    # Small, lane-dense demo dims: batch mult-of-8, feature dims mult-of-128.
    batch, in_dim, hidden_dim, out_dim = 32, 256, 128, 128

    kx, kp = jax.random.split(key)
    x = jax.random.normal(kx, (batch, in_dim), jnp.float32)
    params = init_projection_mlp_params(kp, in_dim, hidden_dim, out_dim)

    # 3-layer path
    out3 = jax.block_until_ready(projection_mlp_forward(x, params, num_layers=3))
    assert out3.shape == (batch, out_dim)
    # Structural check vs. a bf16-matmul-matched reference (tight tolerance).
    ref3_bf16 = projection_mlp_ref(x, params, num_layers=3, matmul_bf16=True)
    assert jnp.allclose(out3, ref3_bf16, atol=2e-3, rtol=2e-3)
    # Semantic check vs. the full-f32 PyTorch-style reference (bf16 MXU tolerance).
    ref3_f32 = projection_mlp_ref(x, params, num_layers=3, matmul_bf16=False)
    assert jnp.allclose(out3, ref3_f32, atol=5e-2, rtol=5e-2)

    # 2-layer path (set_layers(2) equivalent)
    out2 = jax.block_until_ready(projection_mlp_forward(x, params, num_layers=2))
    ref2_bf16 = projection_mlp_ref(x, params, num_layers=2, matmul_bf16=True)
    assert jnp.allclose(out2, ref2_bf16, atol=2e-3, rtol=2e-3)

    print("KERNEL_OK")
</pallas_src>

<mosaic_0001>
module attributes {stable_mosaic.version = 11 : i64} {
  func.func @_fused_mlp_kernel(%arg0: i32, %arg1: memref<32x256xf32, #tpu.memory_space<vmem>>, %arg2: memref<256x128xbf16, #tpu.memory_space<vmem>>, %arg3: memref<128x128xbf16, #tpu.memory_space<vmem>>, %arg4: memref<128x128xbf16, #tpu.memory_space<vmem>>, %arg5: memref<6x128xf32, #tpu.memory_space<vmem>>, %arg6: memref<32x128xf32, #tpu.memory_space<vmem>>) attributes {dimension_semantics = [#tpu.dimension_semantics<arbitrary>], iteration_bounds = array<i64: 1>, scalar_prefetch = 0 : i64, scratch_operands = 0 : i64, tpu.core_type = #tpu.core_type<tc>, window_params = [{pipeline_mode = #tpu.pipeline_mode<synchronous>, transform_indices = @transform_0, window_bounds = array<i64: 32, 256>}, {pipeline_mode = #tpu.pipeline_mode<synchronous>, transform_indices = @transform_1, window_bounds = array<i64: 256, 128>}, {pipeline_mode = #tpu.pipeline_mode<synchronous>, transform_indices = @transform_2, window_bounds = array<i64: 128, 128>}, {pipeline_mode = #tpu.pipeline_mode<synchronous>, transform_indices = @transform_3, window_bounds = array<i64: 128, 128>}, {pipeline_mode = #tpu.pipeline_mode<synchronous>, transform_indices = @transform_4, window_bounds = array<i64: 6, 128>}, {pipeline_mode = #tpu.pipeline_mode<synchronous>, transform_indices = @transform_5, window_bounds = array<i64: 32, 128>}]} {
    %c0 = arith.constant 0 : index
    %c0_0 = arith.constant 0 : index
    %0 = vector.load %arg1[%c0, %c0_0] : memref<32x256xf32, #tpu.memory_space<vmem>>, vector<32x256xf32>
    %1 = arith.truncf %0 : vector<32x256xf32> to vector<32x256xbf16>
    %c0_1 = arith.constant 0 : index
    %c0_2 = arith.constant 0 : index
    %2 = vector.load %arg2[%c0_1, %c0_2] : memref<256x128xbf16, #tpu.memory_space<vmem>>, vector<256x128xbf16>
    %cst = arith.constant dense<0.000000e+00> : vector<32x128xf32>
    %3 = tpu.matmul %1, %2, %cst {dimension_numbers = #tpu.dot_dimension_numbers<[1], [0], [0], [1], [0, 0, 1, 1], [], []>} : vector<32x256xbf16>, vector<256x128xbf16>, vector<32x128xf32> -> vector<32x128xf32>
    %cst_3 = arith.constant dense<0.000000e+00> : vector<128xf32>
    %4 = vector.multi_reduction <add>, %3, %cst_3 [0] : vector<32x128xf32> to vector<128xf32>
    %5 = vector.shape_cast %4 : vector<128xf32> to vector<1x128xf32>
    %cst_4 = arith.constant 3.125000e-02 : f32
    %6 = vector.broadcast %cst_4 : f32 to vector<1x128xf32>
    %7 = arith.mulf %5, %6 : vector<1x128xf32>
    %8 = arith.mulf %3, %3 : vector<32x128xf32>
    %cst_5 = arith.constant dense<0.000000e+00> : vector<128xf32>
    %9 = vector.multi_reduction <add>, %8, %cst_5 [0] : vector<32x128xf32> to vector<128xf32>
    %10 = vector.shape_cast %9 : vector<128xf32> to vector<1x128xf32>
    %cst_6 = arith.constant 3.125000e-02 : f32
    %11 = vector.broadcast %cst_6 : f32 to vector<1x128xf32>
    %12 = arith.mulf %10, %11 : vector<1x128xf32>
    %13 = arith.mulf %7, %7 : vector<1x128xf32>
    %14 = arith.subf %12, %13 : vector<1x128xf32>
    %cst_7 = arith.constant 0.000000e+00 : f32
    %15 = vector.broadcast %cst_7 : f32 to vector<1x128xf32>
    %16 = arith.maximumf %14, %15 : vector<1x128xf32>
    %c0_8 = arith.constant 0 : index
    %c0_9 = arith.constant 0 : index
    %17 = vector.load %arg5[%c0_8, %c0_9] : memref<6x128xf32, #tpu.memory_space<vmem>>, vector<1x128xf32>
    %c1 = arith.constant 1 : index
    %c0_10 = arith.constant 0 : index
    %18 = vector.load %arg5[%c1, %c0_10] : memref<6x128xf32, #tpu.memory_space<vmem>>, vector<1x128xf32>
    %cst_11 = arith.constant 9.99999974E-6 : f32
    %19 = vector.broadcast %cst_11 : f32 to vector<1x128xf32>
    %20 = arith.addf %16, %19 : vector<1x128xf32>
    %21 = math.rsqrt %20 : vector<1x128xf32>
    %22 = arith.mulf %17, %21 : vector<1x128xf32>
    %23 = vector.broadcast %7 : vector<1x128xf32> to vector<32x128xf32>
    %24 = arith.subf %3, %23 : vector<32x128xf32>
    %25 = vector.broadcast %22 : vector<1x128xf32> to vector<32x128xf32>
    %26 = arith.mulf %24, %25 : vector<32x128xf32>
    %27 = vector.broadcast %18 : vector<1x128xf32> to vector<32x128xf32>
    %28 = arith.addf %26, %27 : vector<32x128xf32>
    %cst_12 = arith.constant 0.000000e+00 : f32
    %29 = vector.broadcast %cst_12 : f32 to vector<32x128xf32>
    %30 = arith.maximumf %28, %29 : vector<32x128xf32>
    %31 = arith.truncf %30 : vector<32x128xf32> to vector<32x128xbf16>
    %c0_13 = arith.constant 0 : index
    %c0_14 = arith.constant 0 : index
    %32 = vector.load %arg3[%c0_13, %c0_14] : memref<128x128xbf16, #tpu.memory_space<vmem>>, vector<128x128xbf16>
    %cst_15 = arith.constant dense<0.000000e+00> : vector<32x128xf32>
    %33 = tpu.matmul %31, %32, %cst_15 {dimension_numbers = #tpu.dot_dimension_numbers<[1], [0], [0], [1], [0, 0, 1, 1], [], []>} : vector<32x128xbf16>, vector<128x128xbf16>, vector<32x128xf32> -> vector<32x128xf32>
    %cst_16 = arith.constant dense<0.000000e+00> : vector<128xf32>
    %34 = vector.multi_reduction <add>, %33, %cst_16 [0] : vector<32x128xf32> to vector<128xf32>
    %35 = vector.shape_cast %34 : vector<128xf32> to vector<1x128xf32>
    %cst_17 = arith.constant 3.125000e-02 : f32
    %36 = vector.broadcast %cst_17 : f32 to vector<1x128xf32>
    %37 = arith.mulf %35, %36 : vector<1x128xf32>
    %38 = arith.mulf %33, %33 : vector<32x128xf32>
    %cst_18 = arith.constant dense<0.000000e+00> : vector<128xf32>
    %39 = vector.multi_reduction <add>, %38, %cst_18 [0] : vector<32x128xf32> to vector<128xf32>
    %40 = vector.shape_cast %39 : vector<128xf32> to vector<1x128xf32>
    %cst_19 = arith.constant 3.125000e-02 : f32
    %41 = vector.broadcast %cst_19 : f32 to vector<1x128xf32>
    %42 = arith.mulf %40, %41 : vector<1x128xf32>
    %43 = arith.mulf %37, %37 : vector<1x128xf32>
    %44 = arith.subf %42, %43 : vector<1x128xf32>
    %cst_20 = arith.constant 0.000000e+00 : f32
    %45 = vector.broadcast %cst_20 : f32 to vector<1x128xf32>
    %46 = arith.maximumf %44, %45 : vector<1x128xf32>
    %c2 = arith.constant 2 : index
    %c0_21 = arith.constant 0 : index
    %47 = vector.load %arg5[%c2, %c0_21] : memref<6x128xf32, #tpu.memory_space<vmem>>, vector<1x128xf32>
    %c3 = arith.constant 3 : index
    %c0_22 = arith.constant 0 : index
    %48 = vector.load %arg5[%c3, %c0_22] : memref<6x128xf32, #tpu.memory_space<vmem>>, vector<1x128xf32>
    %cst_23 = arith.constant 9.99999974E-6 : f32
    %49 = vector.broadcast %cst_23 : f32 to vector<1x128xf32>
    %50 = arith.addf %46, %49 : vector<1x128xf32>
    %51 = math.rsqrt %50 : vector<1x128xf32>
    %52 = arith.mulf %47, %51 : vector<1x128xf32>
    %53 = vector.broadcast %37 : vector<1x128xf32> to vector<32x128xf32>
    %54 = arith.subf %33, %53 : vector<32x128xf32>
    %55 = vector.broadcast %52 : vector<1x128xf32> to vector<32x128xf32>
    %56 = arith.mulf %54, %55 : vector<32x128xf32>
    %57 = vector.broadcast %48 : vector<1x128xf32> to vector<32x128xf32>
    %58 = arith.addf %56, %57 : vector<32x128xf32>
    %cst_24 = arith.constant 0.000000e+00 : f32
    %59 = vector.broadcast %cst_24 : f32 to vector<32x128xf32>
    %60 = arith.maximumf %58, %59 : vector<32x128xf32>
    %61 = arith.truncf %60 : vector<32x128xf32> to vector<32x128xbf16>
    %c0_25 = arith.constant 0 : index
    %c0_26 = arith.constant 0 : index
    %62 = vector.load %arg4[%c0_25, %c0_26] : memref<128x128xbf16, #tpu.memory_space<vmem>>, vector<128x128xbf16>
    %cst_27 = arith.constant dense<0.000000e+00> : vector<32x128xf32>
    %63 = tpu.matmul %61, %62, %cst_27 {dimension_numbers = #tpu.dot_dimension_numbers<[1], [0], [0], [1], [0, 0, 1, 1], [], []>} : vector<32x128xbf16>, vector<128x128xbf16>, vector<32x128xf32> -> vector<32x128xf32>
    %cst_28 = arith.constant dense<0.000000e+00> : vector<128xf32>
    %64 = vector.multi_reduction <add>, %63, %cst_28 [0] : vector<32x128xf32> to vector<128xf32>
    %65 = vector.shape_cast %64 : vector<128xf32> to vector<1x128xf32>
    %cst_29 = arith.constant 3.125000e-02 : f32
    %66 = vector.broadcast %cst_29 : f32 to vector<1x128xf32>
    %67 = arith.mulf %65, %66 : vector<1x128xf32>
    %68 = arith.mulf %63, %63 : vector<32x128xf32>
    %cst_30 = arith.constant dense<0.000000e+00> : vector<128xf32>
    %69 = vector.multi_reduction <add>, %68, %cst_30 [0] : vector<32x128xf32> to vector<128xf32>
    %70 = vector.shape_cast %69 : vector<128xf32> to vector<1x128xf32>
    %cst_31 = arith.constant 3.125000e-02 : f32
    %71 = vector.broadcast %cst_31 : f32 to vector<1x128xf32>
    %72 = arith.mulf %70, %71 : vector<1x128xf32>
    %73 = arith.mulf %67, %67 : vector<1x128xf32>
    %74 = arith.subf %72, %73 : vector<1x128xf32>
    %cst_32 = arith.constant 0.000000e+00 : f32
    %75 = vector.broadcast %cst_32 : f32 to vector<1x128xf32>
    %76 = arith.maximumf %74, %75 : vector<1x128xf32>
    %c4 = arith.constant 4 : index
    %c0_33 = arith.constant 0 : index
    %77 = vector.load %arg5[%c4, %c0_33] : memref<6x128xf32, #tpu.memory_space<vmem>>, vector<1x128xf32>
    %c5 = arith.constant 5 : index
    %c0_34 = arith.constant 0 : index
    %78 = vector.load %arg5[%c5, %c0_34] : memref<6x128xf32, #tpu.memory_space<vmem>>, vector<1x128xf32>
    %cst_35 = arith.constant 9.99999974E-6 : f32
    %79 = vector.broadcast %cst_35 : f32 to vector<1x128xf32>
    %80 = arith.addf %76, %79 : vector<1x128xf32>
    %81 = math.rsqrt %80 : vector<1x128xf32>
    %82 = arith.mulf %77, %81 : vector<1x128xf32>
    %83 = vector.broadcast %67 : vector<1x128xf32> to vector<32x128xf32>
    %84 = arith.subf %63, %83 : vector<32x128xf32>
    %85 = vector.broadcast %82 : vector<1x128xf32> to vector<32x128xf32>
    %86 = arith.mulf %84, %85 : vector<32x128xf32>
    %87 = vector.broadcast %78 : vector<1x128xf32> to vector<32x128xf32>
    %88 = arith.addf %86, %87 : vector<32x128xf32>
    %c0_36 = arith.constant 0 : index
    %c0_37 = arith.constant 0 : index
    %89 = vector.load %arg6[%c0_36, %c0_37] : memref<32x128xf32, #tpu.memory_space<vmem>>, vector<32x128xf32>
    tpu.vector_store %arg6[%c0_36, %c0_37], %88 {strides = array<i32>} : memref<32x128xf32, #tpu.memory_space<vmem>>, vector<32x128xf32>,
    return
  }
  func.func @transform_0(%arg0: i32) -> (i32, i32) {
    %c0_i32 = arith.constant 0 : i32
    %c0_i32_0 = arith.constant 0 : i32
    %c0_i32_1 = arith.constant 0 : i32
    return %c0_i32, %c0_i32_0 : i32, i32
  }
  func.func @transform_1(%arg0: i32) -> (i32, i32) {
    %c0_i32 = arith.constant 0 : i32
    %c0_i32_0 = arith.constant 0 : i32
    %c0_i32_1 = arith.constant 0 : i32
    return %c0_i32, %c0_i32_0 : i32, i32
  }
  func.func @transform_2(%arg0: i32) -> (i32, i32) {
    %c0_i32 = arith.constant 0 : i32
    %c0_i32_0 = arith.constant 0 : i32
    %c0_i32_1 = arith.constant 0 : i32
    return %c0_i32, %c0_i32_0 : i32, i32
  }
  func.func @transform_3(%arg0: i32) -> (i32, i32) {
    %c0_i32 = arith.constant 0 : i32
    %c0_i32_0 = arith.constant 0 : i32
    %c0_i32_1 = arith.constant 0 : i32
    return %c0_i32, %c0_i32_0 : i32, i32
  }
  func.func @transform_4(%arg0: i32) -> (i32, i32) {
    %c0_i32 = arith.constant 0 : i32
    %c0_i32_0 = arith.constant 0 : i32
    %c0_i32_1 = arith.constant 0 : i32
    return %c0_i32, %c0_i32_0 : i32, i32
  }
  func.func @transform_5(%arg0: i32) -> (i32, i32) {
    %c0_i32 = arith.constant 0 : i32
    %c0_i32_0 = arith.constant 0 : i32
    %c0_i32_1 = arith.constant 0 : i32
    return %c0_i32, %c0_i32_0 : i32, i32
  }
}

</mosaic_0001>

<bundles_post_ra>
// kernel: tpu_custom_call.1
= control target key start
LH: loop header
LB: loop body
LE: loop exit
PB: predicated region body
PF: predicated region fallthrough
CT: control target
= control target key end

     0   :  { %10 = vsyncpa [#allocation3], 0  ;;  %s1069_s0 = inlined_call_operand.hbm [shape: f32[32,256], index: 0, kind: input, shape index: {}]   ;;  %s1070_s1 = inlined_call_operand.hbm [shape: bf16[256,128], index: 1, kind: input, shape index: {}]   ;;  %s1071_s2 = inlined_call_operand.hbm [shape: bf16[128,128], index: 2, kind: input, shape index: {}]   ;;  %s1072_s3 = inlined_call_operand.hbm [shape: bf16[128,128], index: 3, kind: input, shape index: {}]   ;;  %s1073_s4 = inlined_call_operand.hbm [shape: f32[6,128], index: 4, kind: input, shape index: {}]   ;;  %s1074_s5 = inlined_call_operand.hbm [shape: f32[32,128], index: 5, kind: output, shape index: {}]  }
   0x1   :  { %11 = vsyncpa [#allocation6], 0 }
   0x2   :  { %12 = vsyncpa [#allocation9], 0 }
   0x3   :  { %13 = vsyncpa [#allocation4], 0  ;;  %s995_s18 = smov [#allocation5]  }
   0x4   :  { %s31_s19 = sshll.u32 %s995_s18, 4  ;;  %s32_s19 = int_to_ptr.vmem [resolvable:$true] %s31_s19 }
   0x5   :  { %s875_s20 = scalar_lea.vmem %s32_s19, 2048  ;;  %p880_p1 = scmp.lt.s32.totalorder %s32_s19, %s32_s19 }
   0x6   :  { %p876_p0 = scmp.ne.s32.totalorder %s32_s19, %s875_s20  ;;  %p881_p2 = scmp.lt.s32.totalorder %s875_s20, %s875_s20 }
   0x8   :  { %p882_p3 = por %p881_p2, %p880_p1 }
   0xa   :  { %p883_p4 = pnand %p882_p3, %p876_p0 }
   0xc   :  { %886 = shalt.err (!%p883_p4)
}
   0xd   :  { %s996_s21 = smov 64   ;;  %s997_s22 = smov 4  }
   0xe   :  { %37 = dma.hbm_to_vmem [thread:$0]  %s1070_s1, 2048, %s32_s19, [#allocation6], %s996_s21, %s996_s21, %s997_s22  }
   0xf   :  { %s998_s25 = smov [#allocation8]   ;;  %s999_s27 = smov [#allocation2]  }
  0x10   :  { %s55_s26 = sshll.u32 %s998_s25, 4  ;;  %s19_s28 = sshll.u32 %s999_s27, 4  ;;  %s56_s26 = int_to_ptr.vmem [resolvable:$true] %s55_s26  ;;  %s20_s28 = int_to_ptr.vmem [resolvable:$true] %s19_s28 }
  0x11   :  { %s895_s29 = scalar_lea.vmem %s56_s26, 1024  ;;  %p900_p6 = scmp.lt.s32.totalorder %s56_s26, %s56_s26 }
  0x12   :  { %p896_p5 = scmp.ne.s32.totalorder %s56_s26, %s895_s29  ;;  %p901_p7 = scmp.lt.s32.totalorder %s895_s29, %s895_s29 }
  0x14   :  { %p902_p8 = por %p901_p7, %p900_p6 }
  0x16   :  { %p903_p9 = pnand %p902_p8, %p896_p5 }
  0x18   :  { %906 = shalt.err (!%p903_p9)
}
  0x19   :  { %61 = dma.hbm_to_vmem [thread:$0]  %s1072_s3, 1024, %s56_s26, [#allocation9], %s996_s21, %s996_s21, %s997_s22  }
  0x1a   :  { %s915_s1 = scalar_lea.vmem %s20_s28, 1024  ;;  %p920_p11 = scmp.lt.s32.totalorder %s20_s28, %s20_s28 }
  0x1b   :  { %p916_p10 = scmp.ne.s32.totalorder %s20_s28, %s915_s1  ;;  %p921_p12 = scmp.lt.s32.totalorder %s915_s1, %s915_s1 }
  0x1d   :  { %p922_p13 = por %p921_p12, %p920_p11 }
  0x1f   :  { %p923_p0 = pnand %p922_p13, %p916_p10 }
  0x21   :  { %926 = shalt.err (!%p923_p0)
}
  0x22   :  { %s1000_s7 = smov 256   ;;  %s1001_s8 = smov 16  }
  0x23   :  { %25 = dma.hbm_to_vmem [thread:$0]  %s1069_s0, 1024, %s20_s28, [#allocation3], %s1000_s7, %s1000_s7, %s1001_s8  }
  0x24   :  { %s1002_s11 = smov [#allocation7]   ;;  %s1003_s13 = smov [#allocation10]  }
  0x25   :  { %s43_s12 = sshll.u32 %s1002_s11, 4  ;;  %s68_s14 = sshll.u32 %s1003_s13, 4  ;;  %s44_s12 = int_to_ptr.vmem [resolvable:$true] %s43_s12  ;;  %s69_s14 = int_to_ptr.vmem [resolvable:$true] %s68_s14 }
  0x26   :  { %s935_s3 = scalar_lea.vmem %s44_s12, 1024  ;;  %p940_p2 = scmp.lt.s32.totalorder %s44_s12, %s44_s12 }
  0x27   :  { %p936_p1 = scmp.ne.s32.totalorder %s44_s12, %s935_s3  ;;  %p941_p3 = scmp.lt.s32.totalorder %s935_s3, %s935_s3 }
  0x29   :  { %p942_p4 = por %p941_p3, %p940_p2 }
  0x2b   :  { %p943_p5 = pnand %p942_p4, %p936_p1 }
  0x2d   :  { %946 = shalt.err (!%p943_p5)
}
  0x2e   :  { %49 = dma.hbm_to_vmem [thread:$0]  %s1071_s2, 1024, %s44_s12, [#allocation6], %s996_s21, %s996_s21, %s997_s22  }
  0x2f   :  { %s955_s0 = scalar_lea.vmem %s69_s14, 128  ;;  %p960_p7 = scmp.lt.s32.totalorder %s69_s14, %s69_s14 }
  0x30   :  { %p956_p6 = scmp.ne.s32.totalorder %s69_s14, %s955_s0  ;;  %p961_p8 = scmp.lt.s32.totalorder %s955_s0, %s955_s0 }
  0x32   :  { %p962_p9 = por %p961_p8, %p960_p7 }
  0x34   :  { %p963_p10 = pnand %p962_p9, %p956_p6 }
  0x36   :  { %966 = shalt.err (!%p963_p10)
}
  0x37   :  { %71 = dma.hbm_to_vmem [thread:$0]  %s1073_s4, 128, %s69_s14, [#allocation9]  }
  0x38   :  { %987 = dma.done.wait [#allocation3], 1024  }
  0x39   :  { %988 = vsyncadd [#allocation3], 4294966272 }
  0x3a   :  { %989 = dma.done.wait [#allocation6], 3072  }
  0x3b   :  { %990 = vsyncadd [#allocation6], 4294964224 }
  0x3c   :  { %991 = dma.done.wait [#allocation9], 1152  }
  0x3d   :  { %992 = vsyncadd [#allocation9], 4294966144  ;;  %v829_v0 = vld [vmem:[#allocation5 + $0x78] sm:$0xff]   ;;  %v831_v2 = vld [vmem:[#allocation5 + $0x70] sm:$0xff]   ;;  %s1004_s2 = smov [#allocation11]  }
  0x3e   :  { %v830_v1 = vld [vmem:[#allocation5 + $0x38] sm:$0xff]   ;;  %729 = vmatprep.subr.bf16.mxu0 %v829_v0  ;;  %v832_v3 = vld [vmem:[#allocation5 + $0x30] sm:$0xff]   ;;  %v833_v4 = vld [vmem:[#allocation5 + $0x68] sm:$0xff]   ;;  %s680_s4 = sshll.u32 %s1004_s2, 4  ;;  %s681_s4 = int_to_ptr.vmem [resolvable:$true] %s680_s4 }
  0x3f   :  { %730 = vmatpush3.bf16.msra.mxu0 %v830_v1  ;;  %v834_v5 = vld [vmem:[#allocation5 + $0x28] sm:$0xff]   ;;  %v835_v6 = vld [vmem:[#allocation5 + $0x60] sm:$0xff]   ;;  %v837_v8 = vld [vmem:[#allocation5 + $0x58] sm:$0xff]   ;;  %s967_s19 = scalar_lea.vmem %s681_s4, 512  ;;  %p972_p12 = scmp.lt.s32.totalorder %s681_s4, %s681_s4 }
  0x40   :  { %731 = vmatprep.subr.bf16.mxu0 %v831_v2  ;;  %v836_v7 = vld [vmem:[#allocation5 + $0x20] sm:$0xff]   ;;  %v838_v9 = vld [vmem:[#allocation5 + $0x18] sm:$0xff]   ;;  %v839_v10 = vld [vmem:[#allocation5 + $0x50] sm:$0xff]   ;;  %p968_p11 = scmp.ne.s32.totalorder %s681_s4, %s967_s19  ;;  %p973_p13 = scmp.lt.s32.totalorder %s967_s19, %s967_s19 }
  0x41   :  { %v89_v11 = vld [vmem:[#allocation2 + $0x8] sm:$0xff]  ;;  %v91_v12 = vld [vmem:[#allocation2 + $0x18] sm:$0xff]  ;;  %v840_v14 = vld [vmem:[#allocation5 + $0x10] sm:$0xff]  }
  0x42   :  { %v97_v13 = vpack.c.bf16 %v91_v12, %v89_v11  ;;  %v841_v15 = vld [vmem:[#allocation5 + $0x48] sm:$0xff]   ;;  %v843_v17 = vld [vmem:[#allocation5 + $0x40] sm:$0xff]   ;;  %v90_v20 = vld [vmem:[#allocation2 + $0x10] sm:$0xff]  ;;  %v313_v12 = vlaneseq  ;;  %p974_p0 = por %p973_p13, %p972_p12 }
  0x43   :  { %732 = vmatpush3.bf16.msra.mxu0 %v832_v3  ;;  %v842_v16 = vld [vmem:[#allocation5 + $0x8] sm:$0xff]   ;;  %v844_v18 = vld [vmem:[#allocation5] sm:$0xff]   ;;  %v95_v22 = vld [vmem:[#allocation2 + $0x38] sm:$0xff] }
  0x44   :  { %733 = vmatprep.subr.bf16.mxu0 %v833_v4  ;;  %260 = vmatprep.mubr.bf16.mxu0 %v97_v13  ;;  %v88_v19 = vld [vmem:[#allocation2] sm:$0xff]  ;;  %v93_v21 = vld [vmem:[#allocation2 + $0x28] sm:$0xff]  ;;  %v94_v26 = vld [vmem:[#allocation2 + $0x30] sm:$0xff]  ;;  %v314_v13 = vshrl.u32 %v313_v12, 7  ;;  %p975_p1 = pnand %p974_p0, %p968_p11 }
  0x45   :  { %v96_v23 = vpack.c.bf16 %v90_v20, %v88_v19  ;;  %v99_v24 = vpack.c.bf16 %v95_v22, %v93_v21  ;;  %v92_v25 = vld [vmem:[#allocation2 + $0x20] sm:$0xff]  ;;  %v845_v28 = vld [vmem:[#allocation7 + $0x38] sm:$0xff]   ;;  %v846_v29 = vld [vmem:[#allocation7 + $0x30] sm:$0xff]  }
  0x46   :  { %v98_v27 = vpack.c.bf16 %v94_v26, %v92_v25  ;;  %777 = vmatprep.subr.bf16.mxu1 %v845_v28  ;;  %v847_v30 = vld [vmem:[#allocation7 + $0x28] sm:$0xff]   ;;  %v848_v31 = vld [vmem:[#allocation7 + $0x20] sm:$0xff]   ;;  %v849_v32 = vld [vmem:[#allocation7 + $0x18] sm:$0xff]  }
  0x47   :  { %734 = vmatpush3.bf16.msra.mxu0 %v834_v5  ;;  %778 = vmatpush3.bf16.msra.mxu1 %v845_v28  ;;  %v850_v33 = vld [vmem:[#allocation7 + $0x10] sm:$0xff]   ;;  %v851_v34 = vld [vmem:[#allocation7 + $0x8] sm:$0xff]   ;;  %v852_v35 = vld [vmem:[#allocation7] sm:$0xff]  }
  0x48   :  { %735 = vmatprep.subr.bf16.mxu0 %v835_v6  ;;  %779 = vmatprep.subr.bf16.mxu1 %v846_v29 }
  0x4b   :  { %736 = vmatpush3.bf16.msra.mxu0 %v836_v7  ;;  %780 = vmatpush3.bf16.msra.mxu1 %v846_v29 }
  0x4c   :  { %737 = vmatprep.subr.bf16.mxu0 %v837_v8  ;;  %781 = vmatprep.subr.bf16.mxu1 %v847_v30 }
  0x4f   :  { %738 = vmatpush3.bf16.msra.mxu0 %v838_v9  ;;  %782 = vmatpush3.bf16.msra.mxu1 %v847_v30 }
  0x50   :  { %739 = vmatprep.subr.bf16.mxu0 %v839_v10  ;;  %783 = vmatprep.subr.bf16.mxu1 %v848_v31 }
  0x53   :  { %740 = vmatpush3.bf16.msra.mxu0 %v840_v14  ;;  %784 = vmatpush3.bf16.msra.mxu1 %v848_v31  ;;  %v304_v14 = vld [vmem:[#allocation10] sm:$0x1] }
  0x54   :  { %741 = vmatprep.subr.bf16.mxu0 %v841_v15  ;;  %785 = vmatprep.subr.bf16.mxu1 %v849_v32  ;;  %v1061_v15 = vsub.s32 0, %v314_v13 }
  0x57   :  { %742 = vmatpush3.bf16.msra.mxu0 %v842_v16  ;;  %786 = vmatpush3.bf16.msra.mxu1 %v849_v32 }
  0x58   :  { %743 = vmatprep.subr.bf16.mxu0 %v843_v17  ;;  %787 = vmatprep.subr.bf16.mxu1 %v850_v33 }
  0x5b   :  { %744 = vmatpush3.bf16.msra.mxu0 %v844_v18  ;;  %788 = vmatpush3.bf16.msra.mxu1 %v850_v33 }
  0x5c   :  { %789 = vmatprep.subr.bf16.mxu1 %v851_v34 }
  0x5e   :  { %261 = vmatmul.mubr.bf16.vlgmr.msra.gmra.mxu0 %v96_v23  ;;  %v710_v23 = vld [vmem:[#allocation10 + $0x1] ss:$0 sm:$0xff] }
  0x5f   :  { %268 = vmatprep.mubr.bf16.mxu0 %v99_v24  ;;  %790 = vmatpush3.bf16.msra.mxu1 %v851_v34 }
  0x60   :  { %791 = vmatprep.subr.bf16.mxu1 %v852_v35 }
  0x63   :  { %792 = vmatpush3.bf16.msra.mxu1 %v852_v35 }
  0x66   :  { %269 = vmatmul.mubr.bf16.gmra.mxu0 %v98_v27 }
 0x11e   :  { %v745_v36 = vpop.f32.mrf.mxu0 }
 0x120   :  { %v746_v37 = vpop.f32.mrf.mxu0 }
 0x121   :  { %v747_v42 = vadd.f32 %v746_v37, %v745_v36 }
 0x122   :  { %v748_v38 = vpop.f32.mrf.mxu0 }
 0x123   :  { %v287_v47 = vmul.f32 %v747_v42, %v747_v42 }
 0x124   :  { %v749_v39 = vpop.f32.mrf.mxu0 }
 0x125   :  { %v750_v40 = vadd.f32 %v749_v39, %v748_v38  ;;  %v853_v38 = vld [vmem:[#allocation8 + $0x38] sm:$0xff]   ;;  %v854_v39 = vld [vmem:[#allocation8 + $0x30] sm:$0xff]  }
 0x126   :  { %v751_v41 = vpop.f32.mrf.mxu0  ;;  %797 = vmatprep.subr.bf16.mxu0 %v853_v38 }
 0x127   :  { %v288_v44 = vmul.f32 %v750_v40, %v750_v40  ;;  %v277_v48 = vadd.f32 %v750_v40, %v747_v42  ;;  %798 = vmatpush3.bf16.msra.mxu0 %v853_v38 }
 0x128   :  { %v752_v43 = vpop.f32.mrf.mxu0  ;;  %799 = vmatprep.subr.bf16.mxu0 %v854_v39 }
 0x129   :  { %v753_v45 = vadd.f32 %v752_v43, %v751_v41  ;;  %v291_v51 = vadd.f32 %v288_v44, %v287_v47  ;;  %v856_v41 = vld [vmem:[#allocation8 + $0x20] sm:$0xff]   ;;  %v858_v43 = vld [vmem:[#allocation8 + $0x10] sm:$0xff]   ;;  %v859_v44 = vld [vmem:[#allocation8 + $0x8] sm:$0xff]  }
 0x12a   :  { %v754_v46 = vpop.f32.mrf.mxu0 }
 0x12b   :  { %v289_v49 = vmul.f32 %v753_v45, %v753_v45  ;;  %v278_v52 = vadd.f32 %v753_v45, %v277_v48  ;;  %800 = vmatpush3.bf16.msra.mxu0 %v854_v39 }
 0x12c   :  { %v755_v50 = vpop.f32.mrf.mxu0 }
 0x12d   :  { %v756_v53 = vadd.f32 %v755_v50, %v754_v46  ;;  %v292_v54 = vadd.f32 %v291_v51, %v289_v49 }
 0x12f   :  { %v279_v55 = vadd.f32 %v756_v53, %v278_v52  ;;  %v290_v56 = vmul.f32 %v756_v53, %v756_v53 }
 0x131   :  { %v280_v57 = vrot.slane %v279_v55, 4  ;;  %v293_v58 = vadd.f32 %v292_v54, %v290_v56 }
 0x133   :  { %v281_v59 = vadd.f32 %v280_v57, %v279_v55  ;;  %v294_v60 = vrot.slane %v293_v58, 4 }
 0x135   :  { %v282_v61 = vrot.slane %v281_v59, 2  ;;  %v295_v62 = vadd.f32 %v294_v60, %v293_v58 }
 0x137   :  { %v283_v63 = vadd.f32 %v282_v61, %v281_v59  ;;  %v296_v0 = vrot.slane %v295_v62, 2 }
 0x139   :  { %v284_v1 = vrot.slane %v283_v63, 1  ;;  %v297_v2 = vadd.f32 %v296_v0, %v295_v62 }
 0x13b   :  { %v285_v3 = vadd.f32 %v284_v1, %v283_v63  ;;  %v298_v4 = vrot.slane %v297_v2, 1 }
 0x13d   :  { %v286_v5 = vmul.f32 0.03125, %v285_v3  ;;  %v299_v6 = vadd.f32 %v298_v4, %v297_v2 }
 0x13f   :  { %v300_v7 = vmul.f32 0.03125, %v299_v6  ;;  %v301_v8 = vmul.f32 %v286_v5, %v286_v5  ;;  %v312_v18 = vsub.f32 %v756_v53, %v286_v5  ;;  %v309_v20 = vsub.f32 %v747_v42, %v286_v5  ;;  %v857_v42 = vld [vmem:[#allocation8 + $0x18] sm:$0xff]  }
 0x140   :  { %v310_v21 = vsub.f32 %v750_v40, %v286_v5  ;;  %v311_v22 = vsub.f32 %v753_v45, %v286_v5  ;;  %v855_v40 = vld [vmem:[#allocation8 + $0x28] sm:$0xff]   ;;  %v860_v45 = vld [vmem:[#allocation8] sm:$0xff]  }
 0x141   :  { %v302_v9 = vsub.f32 %v300_v7, %v301_v8  ;;  %801 = vmatprep.subr.bf16.mxu0 %v855_v40 }
 0x142   :  { %802 = vmatpush3.bf16.msra.mxu0 %v855_v40 }
 0x143   :  { %v303_v10 = vmax.f32 %v302_v9, 0.0  ;;  %803 = vmatprep.subr.bf16.mxu0 %v856_v41 }
 0x145   :  { %v306_v11 = vadd.f32 1e-05, %v303_v10 }
 0x146   :  { %804 = vmatpush3.bf16.msra.mxu0 %v856_v41 }
 0x147   :  { %861 = vrsqrt.f32 %v306_v11  ;;  %805 = vmatprep.subr.bf16.mxu0 %v857_v42 }
 0x14a   :  { %806 = vmatpush3.bf16.msra.mxu0 %v857_v42 }
 0x14b   :  { %807 = vmatprep.subr.bf16.mxu0 %v858_v43 }
 0x14e   :  { %808 = vmatpush3.bf16.msra.mxu0 %v858_v43 }
 0x14f   :  { %809 = vmatprep.subr.bf16.mxu0 %v859_v44 }
 0x152   :  { %810 = vmatpush3.bf16.msra.mxu0 %v859_v44 }
 0x153   :  { %811 = vmatprep.subr.bf16.mxu0 %v860_v45 }
 0x154   :  { %v862_v16 = vpop.eup %861 }
 0x155   :  { %v308_v17 = vmul.f32 %v862_v16, %v304_v14  ;;  %v475_v14 = vld [vmem:[#allocation10 + $0x2] sm:$0x1] }
 0x156   :  { %812 = vmatpush3.bf16.msra.mxu0 %v860_v45 }
 0x157   :  { %v316_v19 = vrot.slane %v308_v17, %v1061_v15 }
 0x159   :  { %v320_v24 = vmul.f32 %v316_v19, %v312_v18  ;;  %v317_v25 = vmul.f32 %v316_v19, %v309_v20  ;;  %v318_v26 = vmul.f32 %v316_v19, %v310_v21  ;;  %v319_v27 = vmul.f32 %v316_v19, %v311_v22 }
 0x15b   :  { %v325_v28 = vadd.f32 %v710_v23, %v317_v25  ;;  %v326_v29 = vadd.f32 %v710_v23, %v318_v26  ;;  %v327_v30 = vadd.f32 %v710_v23, %v319_v27  ;;  %v328_v31 = vadd.f32 %v710_v23, %v320_v24  ;;  %v719_v23 = vld [vmem:[#allocation10 + $0x3] ss:$0 sm:$0xff] }
 0x15d   :  { %v329_v32 = vmax.f32 %v325_v28, 0.0  ;;  %v330_v33 = vmax.f32 %v326_v29, 0.0  ;;  %v331_v34 = vmax.f32 %v327_v30, 0.0  ;;  %v332_v35 = vmax.f32 %v328_v31, 0.0 }
 0x15f   :  { %v333_v36 = vpack.c.bf16 %v330_v33, %v329_v32  ;;  %v334_v37 = vpack.c.bf16 %v332_v35, %v331_v34 }
 0x161   :  { %793 = vmatprep.mubr.bf16.mxu1 %v333_v36 }
 0x162   :  { %794 = vmatmul.mubr.bf16.vlgmr.msra.gmra.mxu1 %v334_v37 }
 0x222   :  { %v795_v46 = vpop.f32.mrf.mxu1 }
 0x223   :  { %v460_v53 = vmul.f32 %v795_v46, %v795_v46 }
 0x224   :  { %v433_v47 = vpop.f32.mrf.mxu1 }
 0x225   :  { %v458_v50 = vmul.f32 %v433_v47, %v433_v47 }
 0x226   :  { %v796_v48 = vpop.f32.mrf.mxu1 }
 0x227   :  { %v461_v56 = vmul.f32 %v796_v48, %v796_v48 }
 0x228   :  { %v436_v49 = vpop.f32.mrf.mxu1 }
 0x229   :  { %v448_v51 = vadd.f32 %v436_v49, %v433_v47  ;;  %v459_v52 = vmul.f32 %v436_v49, %v436_v49 }
 0x22b   :  { %v449_v54 = vadd.f32 %v795_v46, %v448_v51  ;;  %v462_v55 = vadd.f32 %v459_v52, %v458_v50 }
 0x22d   :  { %v450_v57 = vadd.f32 %v796_v48, %v449_v54  ;;  %v463_v58 = vadd.f32 %v462_v55, %v460_v53 }
 0x22f   :  { %v451_v59 = vrot.slane %v450_v57, 4  ;;  %v464_v60 = vadd.f32 %v463_v58, %v461_v56 }
 0x231   :  { %v452_v61 = vadd.f32 %v451_v59, %v450_v57  ;;  %v465_v62 = vrot.slane %v464_v60, 4 }
 0x233   :  { %v453_v63 = vrot.slane %v452_v61, 2  ;;  %v466_v0 = vadd.f32 %v465_v62, %v464_v60 }
 0x235   :  { %v454_v1 = vadd.f32 %v453_v63, %v452_v61  ;;  %v467_v2 = vrot.slane %v466_v0, 2 }
 0x237   :  { %v455_v3 = vrot.slane %v454_v1, 1  ;;  %v468_v4 = vadd.f32 %v467_v2, %v466_v0 }
 0x239   :  { %v456_v5 = vadd.f32 %v455_v3, %v454_v1  ;;  %v469_v6 = vrot.slane %v468_v4, 1 }
 0x23b   :  { %v457_v7 = vmul.f32 0.03125, %v456_v5  ;;  %v470_v8 = vadd.f32 %v469_v6, %v468_v4  ;;  %v646_v6 = vld [vmem:[#allocation10 + $0x4] sm:$0x1] }
 0x23d   :  { %v471_v9 = vmul.f32 0.03125, %v470_v8  ;;  %v472_v10 = vmul.f32 %v457_v7, %v457_v7  ;;  %v481_v18 = vsub.f32 %v436_v49, %v457_v7  ;;  %v482_v19 = vsub.f32 %v795_v46, %v457_v7 }
 0x23e   :  { %v483_v20 = vsub.f32 %v796_v48, %v457_v7  ;;  %v480_v22 = vsub.f32 %v433_v47, %v457_v7 }
 0x23f   :  { %v473_v11 = vsub.f32 %v471_v9, %v472_v10 }
 0x241   :  { %v474_v12 = vmax.f32 %v473_v11, 0.0 }
 0x243   :  { %v477_v13 = vadd.f32 1e-05, %v474_v12 }
 0x245   :  { %863 = vrsqrt.f32 %v477_v13 }
 0x252   :  { %v864_v16 = vpop.eup %863 }
 0x253   :  { %v479_v17 = vmul.f32 %v864_v16, %v475_v14  ;;  %v728_v14 = vld [vmem:[#allocation10 + $0x5] ss:$0 sm:$0xff] }
 0x255   :  { %v487_v21 = vrot.slane %v479_v17, %v1061_v15 }
 0x257   :  { %v489_v24 = vmul.f32 %v487_v21, %v481_v18  ;;  %v490_v25 = vmul.f32 %v487_v21, %v482_v19  ;;  %v491_v26 = vmul.f32 %v487_v21, %v483_v20  ;;  %v488_v27 = vmul.f32 %v487_v21, %v480_v22 }
 0x259   :  { %v497_v28 = vadd.f32 %v719_v23, %v489_v24  ;;  %v498_v29 = vadd.f32 %v719_v23, %v490_v25  ;;  %v499_v30 = vadd.f32 %v719_v23, %v491_v26  ;;  %v496_v31 = vadd.f32 %v719_v23, %v488_v27 }
 0x25b   :  { %v500_v32 = vmax.f32 %v496_v31, 0.0  ;;  %v501_v33 = vmax.f32 %v497_v28, 0.0  ;;  %v502_v34 = vmax.f32 %v498_v29, 0.0  ;;  %v503_v35 = vmax.f32 %v499_v30, 0.0 }
 0x25d   :  { %v504_v36 = vpack.c.bf16 %v501_v33, %v500_v32  ;;  %v505_v37 = vpack.c.bf16 %v503_v35, %v502_v34 }
 0x25f   :  { %813 = vmatprep.mubr.bf16.mxu0 %v504_v36 }
 0x260   :  { %814 = vmatmul.mubr.bf16.vlgmr.msra.gmra.mxu0 %v505_v37 }
 0x320   :  { %v815_v38 = vpop.f32.mrf.mxu0 }
 0x321   :  { %v631_v45 = vmul.f32 %v815_v38, %v815_v38 }
 0x322   :  { %v604_v39 = vpop.f32.mrf.mxu0 }
 0x323   :  { %v629_v42 = vmul.f32 %v604_v39, %v604_v39 }
 0x324   :  { %v816_v40 = vpop.f32.mrf.mxu0 }
 0x325   :  { %v632_v48 = vmul.f32 %v816_v40, %v816_v40 }
 0x326   :  { %v607_v41 = vpop.f32.mrf.mxu0 }
 0x327   :  { %v619_v43 = vadd.f32 %v607_v41, %v604_v39  ;;  %v630_v44 = vmul.f32 %v607_v41, %v607_v41 }
 0x329   :  { %v620_v46 = vadd.f32 %v815_v38, %v619_v43  ;;  %v633_v47 = vadd.f32 %v630_v44, %v629_v42 }
 0x32b   :  { %v621_v49 = vadd.f32 %v816_v40, %v620_v46  ;;  %v634_v50 = vadd.f32 %v633_v47, %v631_v45 }
 0x32d   :  { %v622_v51 = vrot.slane %v621_v49, 4  ;;  %v635_v52 = vadd.f32 %v634_v50, %v632_v48 }
 0x32f   :  { %v623_v53 = vadd.f32 %v622_v51, %v621_v49  ;;  %v636_v54 = vrot.slane %v635_v52, 4 }
 0x331   :  { %v624_v55 = vrot.slane %v623_v53, 2  ;;  %v637_v56 = vadd.f32 %v636_v54, %v635_v52 }
 0x333   :  { %v625_v57 = vadd.f32 %v624_v55, %v623_v53  ;;  %v638_v58 = vrot.slane %v637_v56, 2 }
 0x335   :  { %v626_v59 = vrot.slane %v625_v57, 1  ;;  %v639_v60 = vadd.f32 %v638_v58, %v637_v56 }
 0x337   :  { %v627_v61 = vadd.f32 %v626_v59, %v625_v57  ;;  %v640_v62 = vrot.slane %v639_v60, 1 }
 0x339   :  { %v628_v63 = vmul.f32 0.03125, %v627_v61  ;;  %v641_v0 = vadd.f32 %v640_v62, %v639_v60 }
 0x33b   :  { %v642_v1 = vmul.f32 0.03125, %v641_v0  ;;  %v643_v2 = vmul.f32 %v628_v63, %v628_v63  ;;  %v651_v9 = vsub.f32 %v604_v39, %v628_v63  ;;  %v652_v10 = vsub.f32 %v607_v41, %v628_v63 }
 0x33c   :  { %v653_v11 = vsub.f32 %v815_v38, %v628_v63  ;;  %v654_v12 = vsub.f32 %v816_v40, %v628_v63 }
 0x33d   :  { %v644_v3 = vsub.f32 %v642_v1, %v643_v2 }
 0x33f   :  { %v645_v4 = vmax.f32 %v644_v3, 0.0 }
 0x341   :  { %v648_v5 = vadd.f32 1e-05, %v645_v4 }
 0x343   :  { %865 = vrsqrt.f32 %v648_v5 }
 0x350   :  { %v866_v7 = vpop.eup %865 }
 0x351   :  { %v650_v8 = vmul.f32 %v866_v7, %v646_v6 }
 0x353   :  { %v658_v13 = vrot.slane %v650_v8, %v1061_v15 }
 0x355   :  { %v659_v16 = vmul.f32 %v658_v13, %v651_v9  ;;  %v660_v17 = vmul.f32 %v658_v13, %v652_v10  ;;  %v661_v18 = vmul.f32 %v658_v13, %v653_v11  ;;  %v662_v19 = vmul.f32 %v658_v13, %v654_v12 }
 0x357   :  { %v667_v20 = vadd.f32 %v728_v14, %v659_v16  ;;  %v668_v21 = vadd.f32 %v728_v14, %v660_v17  ;;  %v669_v22 = vadd.f32 %v728_v14, %v661_v18  ;;  %v670_v23 = vadd.f32 %v728_v14, %v662_v19 }
 0x359   :  { %672 = vst [vmem:[#allocation11 + $0x8] sm:$0xff] %v668_v21  ;;  %671 = vst [vmem:[#allocation11] sm:$0xff] %v667_v20 }
 0x35a   :  { %673 = vst [vmem:[#allocation11 + $0x10] sm:$0xff] %v669_v22  ;;  %674 = vst [vmem:[#allocation11 + $0x18] sm:$0xff] %v670_v23 }
 0x35b   :  { %978 = shalt.err (!%p975_p1)
}
 0x35c   :  { %s1005_s20 = smov 128   ;;  %s1006_s21 = smov 8  }
 0x35d   :  { %686 = dma.vmem_to_hbm [thread:$0]  %s681_s4, 512, %s1074_s5, [#allocation4], %s1005_s20, %s1005_s20, %s1006_s21  }
 0x35e   :  { %993 = dma.done.wait [#allocation4], 512  }
 0x35f   :  { %994 = vsyncadd [#allocation4], 4294966784 }
 0x360   :  { %690 = vsyncpa [#allocation3], 1 }
 0x361   :  { %691 = vsyncpa [#allocation6], 1 }
 0x362   :  { %692 = vsyncpa [#allocation9], 1 }
 0x363   :  { %693 = vsyncpa [#allocation4], 1 }

</bundles_post_ra>
